<compile_context>
chip_gen: v6e
topology: v6e:2x2x1
jax: 0.10.0
libtpu: 0.0.40
codegen_flags: <defaults>
</compile_context>

<pallas_src>
import functools
import math

import jax
import jax.numpy as jnp
from jax.experimental import pallas as pl
from jax.experimental.pallas import tpu as pltpu

BN_EPS = 1e-5
NEG_FILL = -1e30  # padding value that vanishes under exp() in (log)softmax


def _round_up(n, m):
    return ((n + m - 1) // m) * m


def _pad2d(a, rows, cols, value=0.0):
    r, c = a.shape
    if r == rows and c == cols:
        return a
    return jnp.pad(a, ((0, rows - r), (0, cols - c)), constant_values=value)


# --------------------------------------------------------------------------
# Kernel 1: encoder.  grid = (batch_tiles, gene_k_tiles)
#   acc += x_tile @ W1_tile                  (K accumulation over gene tiles)
#   last k: h = relu(acc + b1); mu = h @ W_mu + b_mu
#           delta = mu ; theta_aug = [softmax(mu) | one_hot(batch)]
# --------------------------------------------------------------------------
def _encoder_kernel(x_ref, w1_ref, b1_ref, wmu_ref, bmu_ref, onehot_ref,
                    delta_ref, theta_ref, acc_ref):
    k = pl.program_id(1)

    @pl.when(k == 0)
    def _():
        acc_ref[...] = jnp.zeros_like(acc_ref)

    acc_ref[...] += jnp.dot(x_ref[...], w1_ref[...],
                            preferred_element_type=jnp.float32)

    @pl.when(k == pl.num_programs(1) - 1)
    def _():
        h = jnp.maximum(acc_ref[...] + b1_ref[...], 0.0)
        mu = jnp.dot(h.astype(wmu_ref.dtype), wmu_ref[...],
                     preferred_element_type=jnp.float32) + bmu_ref[...]
        delta_ref[...] = mu
        m = jnp.max(mu, axis=-1, keepdims=True)
        e = jnp.exp(mu - m)  # padded topic cols (bmu = NEG_FILL) -> exactly 0
        theta = e * pl.reciprocal(jnp.sum(e, axis=-1, keepdims=True),
                                  approx=True)
        t = theta.shape[-1]
        theta_ref[:, :t] = theta            # softmax part
        theta_ref[:, t:] = onehot_ref[...]  # one-hot batch id part (fold bias)


# --------------------------------------------------------------------------
# Kernel 2: decoder (fused).  grid = (batch_tiles, gene_tiles)
#   logits_tile = theta_aug @ beta_aug_tile      (bias folded into the matmul)
#   logits_tile stored into the VMEM-resident (TMd, Gp) recon block;
#   online logsumexp across gene tiles; last tile subtracts lse in place.
# --------------------------------------------------------------------------
def _decoder_kernel(theta_ref, beta_ref, recon_ref, m_scr, s_scr):
    k = pl.program_id(1)
    gb = beta_ref.shape[1]

    @pl.when(k == 0)
    def _():
        # NOTE: relies on s == 0 at the first tile so 0 * exp(-inf - m) == 0;
        # padded logits stay finite (NEG_FILL), never -inf, so no NaNs.
        m_scr[...] = jnp.full_like(m_scr, -jnp.inf)
        s_scr[...] = jnp.zeros_like(s_scr)

    logits = jnp.dot(theta_ref[...].astype(beta_ref.dtype), beta_ref[...],
                     preferred_element_type=jnp.float32)

    col = pl.multiple_of(k * gb, 128)
    recon_ref[:, pl.ds(col, gb)] = logits       # aligned lane-dense store

    m_new = jnp.maximum(m_scr[...], jnp.max(logits, axis=-1, keepdims=True))
    s_scr[...] = (s_scr[...] * jnp.exp(m_scr[...] - m_new)
                  + jnp.sum(jnp.exp(logits - m_new), axis=-1, keepdims=True))
    m_scr[...] = m_new

    @pl.when(k == pl.num_programs(1) - 1)
    def _():
        lse = m_scr[...] + jnp.log(s_scr[...])
        recon_ref[...] = recon_ref[...] - lse   # in-place log-softmax finalize


# --------------------------------------------------------------------------
# Wrapper
# --------------------------------------------------------------------------
def cl_scetm_forward(x, params, batch_indices, *,
                     batch_block=512, dec_batch_block=128, gene_block=1024,
                     compute_dtype=jnp.bfloat16,
                     vmem_limit_bytes=64 * 1024 * 1024):
    B, G = x.shape
    H = params["w1"].shape[1]
    T = params["w_mu"].shape[1]
    NB = params["batch_bias"].shape[0]
    f32 = jnp.float32

    # ---- parameter-only glue (hoisted out of the kernels) ------------------
    # Fold eval-mode BatchNorm (running stats) into the first Linear.
    bn_scale = params["bn_gamma"] / jnp.sqrt(params["bn_running_var"] + BN_EPS)
    w1f = params["w1"] * bn_scale                                  # [G, H]
    b1f = (params["b1"] - params["bn_running_mean"]) * bn_scale + params["bn_beta"]
    # Input-independent decoder factor (no in-kernel transpose).
    beta = jnp.dot(params["alpha"], params["rho"].T)               # [T, G]

    # ---- padded / tiled geometry -------------------------------------------
    itemsize = jnp.dtype(compute_dtype).itemsize
    sub = {4: 8, 2: 16, 1: 32}[itemsize]          # sublane packing minimum

    TMe = _round_up(min(batch_block, _round_up(B, sub)), sub)   # encoder rows
    Bp = _round_up(B, TMe)
    TMd = math.gcd(TMe, _round_up(min(dec_batch_block, TMe), sub))  # decoder rows
    GB = min(_round_up(gene_block, 128), _round_up(G, 128))     # gene tile
    Gp = _round_up(G, GB)
    Hp = _round_up(H, 128)
    Tp = _round_up(T, 128)
    NBP = _round_up(NB, 128)                      # one-hot lane width
    Kp = Tp + NBP                                 # fused decoder K
    nbt_e, nbt_d, ngt = Bp // TMe, Bp // TMd, Gp // GB

    xp   = _pad2d(x, Bp, Gp).astype(compute_dtype)
    w1fp = _pad2d(w1f, Gp, Hp).astype(compute_dtype)
    b1fp = _pad2d(b1f.reshape(1, H), 1, Hp).astype(f32)
    wmup = _pad2d(params["w_mu"], Hp, Tp).astype(compute_dtype)
    bmup = _pad2d(params["b_mu"].reshape(1, T), 1, Tp, NEG_FILL).astype(f32)

    # beta_aug = [[beta], [batch_bias]] : bias fold makes the decoder a single
    # matmul with K = Tp + NBP.  Padded gene columns of batch_bias get
    # NEG_FILL so they vanish in the log-softmax.
    betap = _pad2d(beta, Tp, Gp)                                    # [Tp, Gp]
    bb = jnp.pad(params["batch_bias"], ((0, 0), (0, Gp - G)),
                 constant_values=NEG_FILL)
    bb = jnp.pad(bb, ((0, NBP - NB), (0, 0)))                       # [NBP, Gp]
    beta_aug = jnp.concatenate([betap, bb], axis=0).astype(compute_dtype)

    bi = jnp.zeros((Bp,), jnp.int32).at[:B].set(batch_indices.astype(jnp.int32))
    onehot = jax.nn.one_hot(bi, NBP, dtype=f32)                     # [Bp, NBP]

    cparams = pltpu.CompilerParams(
        dimension_semantics=("parallel", "arbitrary"),
        vmem_limit_bytes=vmem_limit_bytes)

    # ---- Kernel 1: encoder --------------------------------------------------
    enc_cost = pl.CostEstimate(
        flops=2 * Bp * Gp * Hp + 2 * Bp * Hp * Tp,
        transcendentals=Bp * Tp,
        bytes_accessed=itemsize * (Bp * Gp + nbt_e * Gp * Hp)
        + 4 * (Bp * (Tp + Kp)))
    delta_p, theta_aug = pl.pallas_call(
        _encoder_kernel,
        out_shape=(jax.ShapeDtypeStruct((Bp, Tp), f32),
                   jax.ShapeDtypeStruct((Bp, Kp), f32)),
        grid_spec=pltpu.PrefetchScalarGridSpec(
            num_scalar_prefetch=0,
            grid=(nbt_e, ngt),
            in_specs=[
                pl.BlockSpec((TMe, GB), lambda i, k: (i, k)),   # x
                pl.BlockSpec((GB, Hp),  lambda i, k: (k, 0)),   # W1 (BN folded)
                pl.BlockSpec((1, Hp),   lambda i, k: (0, 0)),   # b1 (BN folded)
                pl.BlockSpec((Hp, Tp),  lambda i, k: (0, 0)),   # W_mu
                pl.BlockSpec((1, Tp),   lambda i, k: (0, 0)),   # b_mu
                pl.BlockSpec((TMe, NBP), lambda i, k: (i, 0)),  # one-hot batch
            ],
            out_specs=[
                pl.BlockSpec((TMe, Tp), lambda i, k: (i, 0)),   # delta
                pl.BlockSpec((TMe, Kp), lambda i, k: (i, 0)),   # theta_aug
            ],
            scratch_shapes=[pltpu.VMEM((TMe, Hp), f32)]),
        compiler_params=cparams,
        cost_estimate=enc_cost,
    )(xp, w1fp, b1fp, wmup, bmup, onehot)

    # ---- Kernel 2: fused decoder (logits + online LSE + normalize) ----------
    dec_cost = pl.CostEstimate(
        flops=2 * Bp * Kp * Gp,
        transcendentals=Bp * Gp,
        bytes_accessed=4 * Bp * Kp + itemsize * nbt_d * Kp * Gp + 4 * Bp * Gp)
    recon_p = pl.pallas_call(
        _decoder_kernel,
        out_shape=jax.ShapeDtypeStruct((Bp, Gp), f32),
        grid_spec=pltpu.PrefetchScalarGridSpec(
            num_scalar_prefetch=0,
            grid=(nbt_d, ngt),
            in_specs=[
                pl.BlockSpec((TMd, Kp), lambda i, k: (i, 0)),   # theta_aug
                pl.BlockSpec((Kp, GB),  lambda i, k: (0, k)),   # beta_aug
            ],
            # Resident across the gene axis -> written back to HBM once per
            # batch tile, already normalized (no separate pass).
            out_specs=pl.BlockSpec((TMd, Gp), lambda i, k: (i, 0)),
            scratch_shapes=[pltpu.VMEM((TMd, 1), f32),
                            pltpu.VMEM((TMd, 1), f32)]),
        compiler_params=cparams,
        cost_estimate=dec_cost,
    )(theta_aug, beta_aug)

    return {
        "delta": delta_p[:B, :T],
        "theta": theta_aug[:B, :T],
        "recon_log": recon_p[:B, :G],
    }


# --------------------------------------------------------------------------
# Parameter construction + pure-JAX reference
# --------------------------------------------------------------------------
def init_params(key, n_genes, n_topics, hidden, gene_emb_dim, n_batches):
    ks = jax.random.split(key, 11)
    s = 0.02
    return {
        "w1":              (jax.random.normal(ks[0], (n_genes, hidden)) * s).astype(jnp.float32),
        "b1":              (jax.random.normal(ks[1], (1, hidden)) * s).astype(jnp.float32),
        "bn_gamma":        (1.0 + 0.1 * jax.random.normal(ks[2], (1, hidden))).astype(jnp.float32),
        "bn_beta":         (0.1 * jax.random.normal(ks[3], (1, hidden))).astype(jnp.float32),
        "bn_running_mean": (0.1 * jax.random.normal(ks[4], (1, hidden))).astype(jnp.float32),
        "bn_running_var":  (1.0 + 0.2 * jax.random.uniform(ks[5], (1, hidden))).astype(jnp.float32),
        "w_mu":            (jax.random.normal(ks[6], (hidden, n_topics)) * s).astype(jnp.float32),
        "b_mu":            (jax.random.normal(ks[7], (1, n_topics)) * s).astype(jnp.float32),
        "alpha":           (jax.random.normal(ks[8], (n_topics, gene_emb_dim)) * s).astype(jnp.float32),
        "rho":             (jax.random.normal(ks[9], (n_genes, gene_emb_dim)) * s).astype(jnp.float32),
        "batch_bias":      (jax.random.normal(ks[10], (n_batches, n_genes)) * s).astype(jnp.float32),
    }


def reference_forward(x, params, batch_indices):
    h = x @ params["w1"] + params["b1"]
    h = ((h - params["bn_running_mean"])
         / jnp.sqrt(params["bn_running_var"] + BN_EPS)
         * params["bn_gamma"] + params["bn_beta"])
    h = jnp.maximum(h, 0.0)
    mu = h @ params["w_mu"] + params["b_mu"]
    theta = jax.nn.softmax(mu, axis=-1)
    beta = params["alpha"] @ params["rho"].T
    logits = theta @ beta + params["batch_bias"][batch_indices]
    recon_log = jax.nn.log_softmax(logits, axis=-1)
    return {"delta": mu, "theta": theta, "recon_log": recon_log}


if __name__ == "__main__":
    key = jax.random.PRNGKey(0)
    k_x, k_p, k_b = jax.random.split(key, 3)

    B, n_genes, n_topics, hidden, gene_emb_dim, n_batches = 8, 256, 64, 128, 128, 2

    # Synthetic count-like input (non-negative), as in scETM usage.
    x = jnp.abs(jax.random.normal(k_x, (B, n_genes), jnp.float32))
    batch_indices = jax.random.randint(k_b, (B,), 0, n_batches)
    params = init_params(k_p, n_genes, n_topics, hidden, gene_emb_dim, n_batches)
    ref = reference_forward(x, params, batch_indices)

    # 1) f32 path with small gene tiles: exercises K-accumulation, the online
    #    logsumexp and the fused in-place normalization over multiple tiles.
    fwd32 = jax.jit(functools.partial(
        cl_scetm_forward, batch_block=256, dec_batch_block=128, gene_block=128,
        compute_dtype=jnp.float32))
    out32 = fwd32(x, params, batch_indices)
    jax.block_until_ready(out32)
    for name in ("delta", "theta", "recon_log"):
        assert out32[name].shape == ref[name].shape, name
        assert jnp.allclose(out32[name], ref[name], atol=1e-4, rtol=1e-4), name

    # 2) default path (bf16 operands, f32 accumulation): looser tolerance.
    fwd_bf16 = jax.jit(cl_scetm_forward)
    outb = fwd_bf16(x, params, batch_indices)
    jax.block_until_ready(outb)
    for name in ("delta", "theta", "recon_log"):
        assert outb[name].shape == ref[name].shape, name
        assert jnp.allclose(outb[name], ref[name], atol=3e-2, rtol=3e-2), name

    print("KERNEL_OK")
</pallas_src>

<mosaic_0001>
module attributes {stable_mosaic.version = 11 : i64} {
  func.func @_decoder_kernel(%arg0: i32, %arg1: i32, %arg2: memref<8x256xf32, #tpu.memory_space<vmem>>, %arg3: memref<256x128xf32, #tpu.memory_space<vmem>>, %arg4: memref<8x256xf32, #tpu.memory_space<vmem>>, %arg5: memref<8x1xf32, #tpu.memory_space<vmem>>, %arg6: memref<8x1xf32, #tpu.memory_space<vmem>>) attributes {dimension_semantics = [#tpu.dimension_semantics<parallel>, #tpu.dimension_semantics<arbitrary>], iteration_bounds = array<i64: 1, 2>, scalar_prefetch = 0 : i64, scratch_operands = 2 : i64, tpu.core_type = #tpu.core_type<tc>, window_params = [{transform_indices = @transform_0, window_bounds = array<i64: 8, 256>}, {transform_indices = @transform_1, window_bounds = array<i64: 256, 128>}, {transform_indices = @transform_2, window_bounds = array<i64: 8, 256>}]} {
    %c0_i32 = arith.constant 0 : i32
    %0 = arith.cmpi eq, %arg1, %c0_i32 : i32
    %1 = arith.extui %0 : i1 to i32
    %c0_i32_0 = arith.constant 0 : i32
    %2 = arith.cmpi ne, %1, %c0_i32_0 : i32
    scf.if %2 {
      %cst_18 = arith.constant 0xFF800000 : f32
      %30 = vector.broadcast %cst_18 : f32 to vector<8x1xf32>
      %c0_19 = arith.constant 0 : index
      %c0_20 = arith.constant 0 : index
      %31 = vector.load %arg5[%c0_19, %c0_20] : memref<8x1xf32, #tpu.memory_space<vmem>>, vector<8x1xf32>
      tpu.vector_store %arg5[%c0_19, %c0_20], %30 {strides = array<i32>} : memref<8x1xf32, #tpu.memory_space<vmem>>, vector<8x1xf32>,
      %cst_21 = arith.constant 0.000000e+00 : f32
      %32 = vector.broadcast %cst_21 : f32 to vector<8x1xf32>
      %c0_22 = arith.constant 0 : index
      %c0_23 = arith.constant 0 : index
      %33 = vector.load %arg6[%c0_22, %c0_23] : memref<8x1xf32, #tpu.memory_space<vmem>>, vector<8x1xf32>
      tpu.vector_store %arg6[%c0_22, %c0_23], %32 {strides = array<i32>} : memref<8x1xf32, #tpu.memory_space<vmem>>, vector<8x1xf32>,
    } else {
    }
    %c0 = arith.constant 0 : index
    %c0_1 = arith.constant 0 : index
    %3 = vector.load %arg2[%c0, %c0_1] : memref<8x256xf32, #tpu.memory_space<vmem>>, vector<8x256xf32>
    %c0_2 = arith.constant 0 : index
    %c0_3 = arith.constant 0 : index
    %4 = vector.load %arg3[%c0_2, %c0_3] : memref<256x128xf32, #tpu.memory_space<vmem>>, vector<256x128xf32>
    %cst = arith.constant dense<0.000000e+00> : vector<8x128xf32>
    %5 = tpu.matmul %3, %4, %cst {dimension_numbers = #tpu.dot_dimension_numbers<[1], [0], [0], [1], [0, 0, 1, 1], [], []>} : vector<8x256xf32>, vector<256x128xf32>, vector<8x128xf32> -> vector<8x128xf32>
    %c128_i32 = arith.constant 128 : i32
    %6 = arith.muli %arg1, %c128_i32 : i32
    %7 = tpu.assume_multiple %6, 128 : i32
    %c0_4 = arith.constant 0 : index
    %8 = arith.index_cast %7 : i32 to index
    %9 = vector.load %arg4[%c0_4, %8] : memref<8x256xf32, #tpu.memory_space<vmem>>, vector<8x128xf32>
    tpu.vector_store %arg4[%c0_4, %8], %5 {strides = array<i32>} : memref<8x256xf32, #tpu.memory_space<vmem>>, vector<8x128xf32>,
    %c0_5 = arith.constant 0 : index
    %c0_6 = arith.constant 0 : index
    %10 = vector.load %arg5[%c0_5, %c0_6] : memref<8x1xf32, #tpu.memory_space<vmem>>, vector<8x1xf32>
    %cst_7 = arith.constant dense<0xFF800000> : vector<8xf32>
    %11 = vector.multi_reduction <maximumf>, %5, %cst_7 [1] : vector<8x128xf32> to vector<8xf32>
    %12 = vector.shape_cast %11 : vector<8xf32> to vector<8x1xf32>
    %13 = arith.maximumf %10, %12 : vector<8x1xf32>
    %c0_8 = arith.constant 0 : index
    %c0_9 = arith.constant 0 : index
    %14 = vector.load %arg6[%c0_8, %c0_9] : memref<8x1xf32, #tpu.memory_space<vmem>>, vector<8x1xf32>
    %c0_10 = arith.constant 0 : index
    %c0_11 = arith.constant 0 : index
    %15 = vector.load %arg5[%c0_10, %c0_11] : memref<8x1xf32, #tpu.memory_space<vmem>>, vector<8x1xf32>
    %16 = arith.subf %15, %13 : vector<8x1xf32>
    %17 = math.exp %16 : vector<8x1xf32>
    %18 = arith.mulf %14, %17 : vector<8x1xf32>
    %19 = vector.broadcast %13 : vector<8x1xf32> to vector<8x128xf32>
    %20 = arith.subf %5, %19 : vector<8x128xf32>
    %21 = math.exp %20 : vector<8x128xf32>
    %cst_12 = arith.constant dense<0.000000e+00> : vector<8xf32>
    %22 = vector.multi_reduction <add>, %21, %cst_12 [1] : vector<8x128xf32> to vector<8xf32>
    %23 = vector.shape_cast %22 : vector<8xf32> to vector<8x1xf32>
    %24 = arith.addf %18, %23 : vector<8x1xf32>
    %c0_13 = arith.constant 0 : index
    %c0_14 = arith.constant 0 : index
    %25 = vector.load %arg6[%c0_13, %c0_14] : memref<8x1xf32, #tpu.memory_space<vmem>>, vector<8x1xf32>
    tpu.vector_store %arg6[%c0_13, %c0_14], %24 {strides = array<i32>} : memref<8x1xf32, #tpu.memory_space<vmem>>, vector<8x1xf32>,
    %c0_15 = arith.constant 0 : index
    %c0_16 = arith.constant 0 : index
    %26 = vector.load %arg5[%c0_15, %c0_16] : memref<8x1xf32, #tpu.memory_space<vmem>>, vector<8x1xf32>
    tpu.vector_store %arg5[%c0_15, %c0_16], %13 {strides = array<i32>} : memref<8x1xf32, #tpu.memory_space<vmem>>, vector<8x1xf32>,
    %c1_i32 = arith.constant 1 : i32
    %27 = arith.cmpi eq, %arg1, %c1_i32 : i32
    %28 = arith.extui %27 : i1 to i32
    %c0_i32_17 = arith.constant 0 : i32
    %29 = arith.cmpi ne, %28, %c0_i32_17 : i32
    scf.if %29 {
      %c0_18 = arith.constant 0 : index
      %c0_19 = arith.constant 0 : index
      %30 = vector.load %arg5[%c0_18, %c0_19] : memref<8x1xf32, #tpu.memory_space<vmem>>, vector<8x1xf32>
      %c0_20 = arith.constant 0 : index
      %c0_21 = arith.constant 0 : index
      %31 = vector.load %arg6[%c0_20, %c0_21] : memref<8x1xf32, #tpu.memory_space<vmem>>, vector<8x1xf32>
      %32 = math.log %31 : vector<8x1xf32>
      %33 = arith.addf %30, %32 : vector<8x1xf32>
      %c0_22 = arith.constant 0 : index
      %c0_23 = arith.constant 0 : index
      %34 = vector.load %arg4[%c0_22, %c0_23] : memref<8x256xf32, #tpu.memory_space<vmem>>, vector<8x256xf32>
      %35 = vector.broadcast %33 : vector<8x1xf32> to vector<8x256xf32>
      %36 = arith.subf %34, %35 : vector<8x256xf32>
      %c0_24 = arith.constant 0 : index
      %c0_25 = arith.constant 0 : index
      %37 = vector.load %arg4[%c0_24, %c0_25] : memref<8x256xf32, #tpu.memory_space<vmem>>, vector<8x256xf32>
      tpu.vector_store %arg4[%c0_24, %c0_25], %36 {strides = array<i32>} : memref<8x256xf32, #tpu.memory_space<vmem>>, vector<8x256xf32>,
    } else {
    }
    return
  }
  func.func @transform_0(%arg0: i32, %arg1: i32) -> (i32, i32) {
    %c0_i32 = arith.constant 0 : i32
    %c0_i32_0 = arith.constant 0 : i32
    return %arg0, %c0_i32 : i32, i32
  }
  func.func @transform_1(%arg0: i32, %arg1: i32) -> (i32, i32) {
    %c0_i32 = arith.constant 0 : i32
    %c0_i32_0 = arith.constant 0 : i32
    return %c0_i32, %arg1 : i32, i32
  }
  func.func @transform_2(%arg0: i32, %arg1: i32) -> (i32, i32) {
    %c0_i32 = arith.constant 0 : i32
    %c0_i32_0 = arith.constant 0 : i32
    return %arg0, %c0_i32 : i32, i32
  }
}

module attributes {stable_mosaic.version = 11 : i64} {
  func.func @_encoder_kernel(%arg0: i32, %arg1: i32, %arg2: memref<8x128xf32, #tpu.memory_space<vmem>>, %arg3: memref<128x128xf32, #tpu.memory_space<vmem>>, %arg4: memref<1x128xf32, #tpu.memory_space<vmem>>, %arg5: memref<128x128xf32, #tpu.memory_space<vmem>>, %arg6: memref<1x128xf32, #tpu.memory_space<vmem>>, %arg7: memref<8x128xf32, #tpu.memory_space<vmem>>, %arg8: memref<8x128xf32, #tpu.memory_space<vmem>>, %arg9: memref<8x256xf32, #tpu.memory_space<vmem>>, %arg10: memref<8x128xf32, #tpu.memory_space<vmem>>) attributes {dimension_semantics = [#tpu.dimension_semantics<parallel>, #tpu.dimension_semantics<arbitrary>], iteration_bounds = array<i64: 1, 2>, scalar_prefetch = 0 : i64, scratch_operands = 1 : i64, tpu.core_type = #tpu.core_type<tc>, window_params = [{transform_indices = @transform_0, window_bounds = array<i64: 8, 128>}, {transform_indices = @transform_1, window_bounds = array<i64: 128, 128>}, {pipeline_mode = #tpu.pipeline_mode<synchronous>, transform_indices = @transform_2, window_bounds = array<i64: 1, 128>}, {pipeline_mode = #tpu.pipeline_mode<synchronous>, transform_indices = @transform_3, window_bounds = array<i64: 128, 128>}, {pipeline_mode = #tpu.pipeline_mode<synchronous>, transform_indices = @transform_4, window_bounds = array<i64: 1, 128>}, {transform_indices = @transform_5, window_bounds = array<i64: 8, 128>}, {transform_indices = @transform_6, window_bounds = array<i64: 8, 128>}, {transform_indices = @transform_7, window_bounds = array<i64: 8, 256>}]} {
    %c0_i32 = arith.constant 0 : i32
    %0 = arith.cmpi eq, %arg1, %c0_i32 : i32
    %1 = arith.extui %0 : i1 to i32
    %c0_i32_0 = arith.constant 0 : i32
    %2 = arith.cmpi ne, %1, %c0_i32_0 : i32
    scf.if %2 {
      %cst_9 = arith.constant 0.000000e+00 : f32
      %12 = vector.broadcast %cst_9 : f32 to vector<8x128xf32>
      %c0_10 = arith.constant 0 : index
      %c0_11 = arith.constant 0 : index
      %13 = vector.load %arg10[%c0_10, %c0_11] : memref<8x128xf32, #tpu.memory_space<vmem>>, vector<8x128xf32>
      tpu.vector_store %arg10[%c0_10, %c0_11], %12 {strides = array<i32>} : memref<8x128xf32, #tpu.memory_space<vmem>>, vector<8x128xf32>,
    } else {
    }
    %c0 = arith.constant 0 : index
    %c0_1 = arith.constant 0 : index
    %3 = vector.load %arg10[%c0, %c0_1] : memref<8x128xf32, #tpu.memory_space<vmem>>, vector<8x128xf32>
    %c0_2 = arith.constant 0 : index
    %c0_3 = arith.constant 0 : index
    %4 = vector.load %arg2[%c0_2, %c0_3] : memref<8x128xf32, #tpu.memory_space<vmem>>, vector<8x128xf32>
    %c0_4 = arith.constant 0 : index
    %c0_5 = arith.constant 0 : index
    %5 = vector.load %arg3[%c0_4, %c0_5] : memref<128x128xf32, #tpu.memory_space<vmem>>, vector<128x128xf32>
    %cst = arith.constant dense<0.000000e+00> : vector<8x128xf32>
    %6 = tpu.matmul %4, %5, %cst {dimension_numbers = #tpu.dot_dimension_numbers<[1], [0], [0], [1], [0, 0, 1, 1], [], []>} : vector<8x128xf32>, vector<128x128xf32>, vector<8x128xf32> -> vector<8x128xf32>
    %7 = arith.addf %3, %6 : vector<8x128xf32>
    %c0_6 = arith.constant 0 : index
    %c0_7 = arith.constant 0 : index
    %8 = vector.load %arg10[%c0_6, %c0_7] : memref<8x128xf32, #tpu.memory_space<vmem>>, vector<8x128xf32>
    tpu.vector_store %arg10[%c0_6, %c0_7], %7 {strides = array<i32>} : memref<8x128xf32, #tpu.memory_space<vmem>>, vector<8x128xf32>,
    %c1_i32 = arith.constant 1 : i32
    %9 = arith.cmpi eq, %arg1, %c1_i32 : i32
    %10 = arith.extui %9 : i1 to i32
    %c0_i32_8 = arith.constant 0 : i32
    %11 = arith.cmpi ne, %10, %c0_i32_8 : i32
    scf.if %11 {
      %c0_9 = arith.constant 0 : index
      %c0_10 = arith.constant 0 : index
      %12 = vector.load %arg10[%c0_9, %c0_10] : memref<8x128xf32, #tpu.memory_space<vmem>>, vector<8x128xf32>
      %c0_11 = arith.constant 0 : index
      %c0_12 = arith.constant 0 : index
      %13 = vector.load %arg4[%c0_11, %c0_12] : memref<1x128xf32, #tpu.memory_space<vmem>>, vector<1x128xf32>
      %14 = vector.broadcast %13 : vector<1x128xf32> to vector<8x128xf32>
      %15 = arith.addf %12, %14 : vector<8x128xf32>
      %cst_13 = arith.constant 0.000000e+00 : f32
      %16 = vector.broadcast %cst_13 : f32 to vector<8x128xf32>
      %17 = arith.maximumf %15, %16 : vector<8x128xf32>
      %c0_14 = arith.constant 0 : index
      %c0_15 = arith.constant 0 : index
      %18 = vector.load %arg5[%c0_14, %c0_15] : memref<128x128xf32, #tpu.memory_space<vmem>>, vector<128x128xf32>
      %cst_16 = arith.constant dense<0.000000e+00> : vector<8x128xf32>
      %19 = tpu.matmul %17, %18, %cst_16 {dimension_numbers = #tpu.dot_dimension_numbers<[1], [0], [0], [1], [0, 0, 1, 1], [], []>} : vector<8x128xf32>, vector<128x128xf32>, vector<8x128xf32> -> vector<8x128xf32>
      %c0_17 = arith.constant 0 : index
      %c0_18 = arith.constant 0 : index
      %20 = vector.load %arg6[%c0_17, %c0_18] : memref<1x128xf32, #tpu.memory_space<vmem>>, vector<1x128xf32>
      %21 = vector.broadcast %20 : vector<1x128xf32> to vector<8x128xf32>
      %22 = arith.addf %19, %21 : vector<8x128xf32>
      %c0_19 = arith.constant 0 : index
      %c0_20 = arith.constant 0 : index
      %23 = vector.load %arg8[%c0_19, %c0_20] : memref<8x128xf32, #tpu.memory_space<vmem>>, vector<8x128xf32>
      tpu.vector_store %arg8[%c0_19, %c0_20], %22 {strides = array<i32>} : memref<8x128xf32, #tpu.memory_space<vmem>>, vector<8x128xf32>,
      %cst_21 = arith.constant dense<0xFF800000> : vector<8xf32>
      %24 = vector.multi_reduction <maximumf>, %22, %cst_21 [1] : vector<8x128xf32> to vector<8xf32>
      %25 = vector.shape_cast %24 : vector<8xf32> to vector<8x1xf32>
      %26 = vector.broadcast %25 : vector<8x1xf32> to vector<8x128xf32>
      %27 = arith.subf %22, %26 : vector<8x128xf32>
      %28 = math.exp %27 : vector<8x128xf32>
      %cst_22 = arith.constant dense<0.000000e+00> : vector<8xf32>
      %29 = vector.multi_reduction <add>, %28, %cst_22 [1] : vector<8x128xf32> to vector<8xf32>
      %30 = vector.shape_cast %29 : vector<8xf32> to vector<8x1xf32>
      %31 = tpu.reciprocal %30 {approx = true} : vector<8x1xf32> -> vector<8x1xf32>
      %32 = vector.broadcast %31 : vector<8x1xf32> to vector<8x128xf32>
      %33 = arith.mulf %28, %32 : vector<8x128xf32>
      %c0_23 = arith.constant 0 : index
      %c0_24 = arith.constant 0 : index
      %34 = vector.load %arg9[%c0_23, %c0_24] : memref<8x256xf32, #tpu.memory_space<vmem>>, vector<8x128xf32>
      tpu.vector_store %arg9[%c0_23, %c0_24], %33 {strides = array<i32>} : memref<8x256xf32, #tpu.memory_space<vmem>>, vector<8x128xf32>,
      %c0_25 = arith.constant 0 : index
      %c0_26 = arith.constant 0 : index
      %35 = vector.load %arg7[%c0_25, %c0_26] : memref<8x128xf32, #tpu.memory_space<vmem>>, vector<8x128xf32>
      %c0_27 = arith.constant 0 : index
      %c128 = arith.constant 128 : index
      %36 = vector.load %arg9[%c0_27, %c128] : memref<8x256xf32, #tpu.memory_space<vmem>>, vector<8x128xf32>
      tpu.vector_store %arg9[%c0_27, %c128], %35 {strides = array<i32>} : memref<8x256xf32, #tpu.memory_space<vmem>>, vector<8x128xf32>,
    } else {
    }
    return
  }
  func.func @transform_0(%arg0: i32, %arg1: i32) -> (i32, i32) {
    %c0_i32 = arith.constant 0 : i32
    return %arg0, %arg1 : i32, i32
  }
  func.func @transform_1(%arg0: i32, %arg1: i32) -> (i32, i32) {
    %c0_i32 = arith.constant 0 : i32
    %c0_i32_0 = arith.constant 0 : i32
    return %arg1, %c0_i32 : i32, i32
  }
  func.func @transform_2(%arg0: i32, %arg1: i32) -> (i32, i32) {
    %c0_i32 = arith.constant 0 : i32
    %c0_i32_0 = arith.constant 0 : i32
    %c0_i32_1 = arith.constant 0 : i32
    return %c0_i32, %c0_i32_0 : i32, i32
  }
  func.func @transform_3(%arg0: i32, %arg1: i32) -> (i32, i32) {
    %c0_i32 = arith.constant 0 : i32
    %c0_i32_0 = arith.constant 0 : i32
    %c0_i32_1 = arith.constant 0 : i32
    return %c0_i32, %c0_i32_0 : i32, i32
  }
  func.func @transform_4(%arg0: i32, %arg1: i32) -> (i32, i32) {
    %c0_i32 = arith.constant 0 : i32
    %c0_i32_0 = arith.constant 0 : i32
    %c0_i32_1 = arith.constant 0 : i32
    return %c0_i32, %c0_i32_0 : i32, i32
  }
  func.func @transform_5(%arg0: i32, %arg1: i32) -> (i32, i32) {
    %c0_i32 = arith.constant 0 : i32
    %c0_i32_0 = arith.constant 0 : i32
    return %arg0, %c0_i32 : i32, i32
  }
  func.func @transform_6(%arg0: i32, %arg1: i32) -> (i32, i32) {
    %c0_i32 = arith.constant 0 : i32
    %c0_i32_0 = arith.constant 0 : i32
    return %arg0, %c0_i32 : i32, i32
  }
  func.func @transform_7(%arg0: i32, %arg1: i32) -> (i32, i32) {
    %c0_i32 = arith.constant 0 : i32
    %c0_i32_0 = arith.constant 0 : i32
    return %arg0, %c0_i32 : i32, i32
  }
}

</mosaic_0001>

<bundles_post_ra>
// kernel: cl_scetm_forward.2
= control target key start
LH: loop header
LB: loop body
LE: loop exit
PB: predicated region body
PF: predicated region fallthrough
CT: control target
= control target key end

     0   :  { %13 = vsyncpa [#allocation4], 0  ;;  %s941_s24 = smov 0   ;;  %s943_s25 = smov 0   ;;  %s1083_s0 = inlined_call_operand.vmem [shape: f32[8,256], index: 0, kind: input, shape index: {}]   ;;  %s1084_s1 = inlined_call_operand.vmem [shape: f32[256,128], index: 1, kind: input, shape index: {}]   ;;  %s1085_s2 = inlined_call_operand.vmem [shape: f32[1,128], index: 2, kind: input, shape index: {}]   ;;  %s1086_s3 = inlined_call_operand.vmem [shape: f32[128,128], index: 3, kind: input, shape index: {}]   ;;  %s1087_s4 = inlined_call_operand.vmem [shape: f32[1,128], index: 4, kind: input, shape index: {}]   ;;  %s1088_s5 = inlined_call_operand.vmem [shape: f32[8,128], index: 5, kind: input, shape index: {}]   ;;  %s1089_s6 = inlined_call_operand.hbm [shape: f32[8,128], index: 6, kind: output, shape index: {0}]   ;;  %s1090_s7 = inlined_call_operand.vmem [shape: f32[8,256], index: 7, kind: output, shape index: {1}]  }
   0x1   :  { %s945_s26 = smov 0  }
   0x2 LB: > { %s682_s27 = sadd.s32 4294967295, %s893_s26   ;;  %s28_s28 = sadd.s32 1, %s889_s25  ;;  %s893_s26 = sphi %s945_s26, %s19_s26   ;;  %s889_s25 = sphi %s943_s25, %s1093_s25   ;;  %s885_s24 = sphi %s941_s24, %s1092_s24  }
   0x3   : > { %p29_p0 = scmp.ge.s32.totalorder %s28_s28, 2  ;;  %p686_p1 = scmp.ge.s32.totalorder %s893_s26, 1 }
   0x4   : > { %p278_p2 = scmp.lt.s32.totalorder %s893_s26, 3 }
   0x5   : > { %s1095_s28 = smov (%p29_p0, %s28_s28), 0 }
   0x6   : > { %p279_p3 = pnand %p686_p1, %p278_p2 }
   0x7   : > { %p324_p4 = scmp.lt.s32.totalorder (!%p279_p3), %s885_s24, 1  ;;  %s688_s29 = sshll.u32 (!%p279_p3), %s885_s24, 4 }
   0x8   : > { %282 = sbr.rel (%p279_p3) target bundleno = 804 (0x324), region = 44  ;;  %p331_p5 = scmp.lt.s32.totalorder (!%p279_p3), %s688_s29, 31 }
   0x9   : > { %p690_p6 = scmp.ne.s32.totalorder (!%p279_p3), %s885_s24, 0 }
   0xd   : > { %s325_s30 = scalar_select %p324_p4, %s885_s24, 1 }
   0xe   : > { %s1097_s29 = smov (!%p331_p5, %s688_s29), 31  ;;  %348 = sbr.rel (%p690_p6) target bundleno = 21 (0x15), region = 48 }
   0xf   : > { %s687_s8 = sshll.u32 %s325_s30, 3  ;;  %s689_s12 = sshll.u32 %s1097_s29, 3 }
  0x10   : > { %s968_s11 = scalar_lea.vmem %s1083_s0, %s687_s8  ;;  %s973_s15 = scalar_lea.vmem %s1084_s1, %s689_s12 }
  0x13   : > { %v895_v0 = vmov 0.0  }
  0x14   : > { %349 = vst [vmem:[#allocation2] sm:$0xff] %v895_v0 }
  0x15 PF: > { %v367_v1 = vld [vmem:[%s973_s15 + $0x78] sm:$0xff]  ;;  %v896_v2 = vmov 0.0   ;;  %v366_v3 = vld [vmem:[%s973_s15 + $0x70] sm:$0xff]  ;;  %vm897_vm0 = vmmov 0   ;;  %v365_v4 = vld [vmem:[%s973_s15 + $0x68] sm:$0xff]  ;;  %p691_p7 = scmp.ne.s32.totalorder %s885_s24, 1 }
  0x16   : > { %733 = vmatprep.subr.mxu0 %v896_v2  ;;  %765 = vmatprep.mubr.msk.f32.mxu0 %vm897_vm0, %v896_v2  ;;  %v364_v5 = vld [vmem:[%s973_s15 + $0x60] sm:$0xff]  ;;  %v363_v6 = vld [vmem:[%s973_s15 + $0x58] sm:$0xff]  ;;  %v362_v7 = vld [vmem:[%s973_s15 + $0x50] sm:$0xff] }
  0x17   : > { %734 = vmatpush3.msra.mxu0 %v367_v1  ;;  %v361_v8 = vld [vmem:[%s973_s15 + $0x48] sm:$0xff]  ;;  %v360_v9 = vld [vmem:[%s973_s15 + $0x40] sm:$0xff]  ;;  %v359_v10 = vld [vmem:[%s973_s15 + $0x38] sm:$0xff] }
  0x18   : > { %735 = vmatprep.subr.mxu0 %v896_v2  ;;  %v358_v11 = vld [vmem:[%s973_s15 + $0x30] sm:$0xff]  ;;  %v357_v12 = vld [vmem:[%s973_s15 + $0x28] sm:$0xff]  ;;  %v356_v13 = vld [vmem:[%s973_s15 + $0x20] sm:$0xff] }
  0x19   : > { %736 = vmatpush3.msra.mxu0 %v366_v3  ;;  %v355_v14 = vld [vmem:[%s973_s15 + $0x18] sm:$0xff]  ;;  %v354_v15 = vld [vmem:[%s973_s15 + $0x10] sm:$0xff]  ;;  %v353_v16 = vld [vmem:[%s973_s15 + $0x8] sm:$0xff] }
  0x1a   : > { %737 = vmatprep.subr.mxu0 %v896_v2  ;;  %v352_v17 = vld [vmem:[%s973_s15] sm:$0xff] }
  0x1b   : > { %738 = vmatpush3.msra.mxu0 %v365_v4  ;;  %v351_v18 = vld [vmem:[%s968_s11] sm:$0xff] }
  0x1c   : > { %739 = vmatprep.subr.mxu0 %v896_v2  ;;  %v350_v19 = vld [vmem:[#allocation2] sm:$0xff] }
  0x1d   : > { %740 = vmatpush3.msra.mxu0 %v364_v5 }
  0x1e   : > { %741 = vmatprep.subr.mxu0 %v896_v2 }
  0x1f   : > { %742 = vmatpush3.msra.mxu0 %v363_v6 }
  0x20   : > { %743 = vmatprep.subr.mxu0 %v896_v2 }
  0x21   : > { %744 = vmatpush3.msra.mxu0 %v362_v7 }
  0x22   : > { %745 = vmatprep.subr.mxu0 %v896_v2 }
  0x23   : > { %746 = vmatpush3.msra.mxu0 %v361_v8 }
  0x24   : > { %747 = vmatprep.subr.mxu0 %v896_v2 }
  0x25   : > { %748 = vmatpush3.msra.mxu0 %v360_v9 }
  0x26   : > { %749 = vmatprep.subr.mxu0 %v896_v2 }
  0x27   : > { %750 = vmatpush3.msra.mxu0 %v359_v10 }
  0x28   : > { %751 = vmatprep.subr.mxu0 %v896_v2 }
  0x29   : > { %752 = vmatpush3.msra.mxu0 %v358_v11 }
  0x2a   : > { %753 = vmatprep.subr.mxu0 %v896_v2 }
  0x2b   : > { %754 = vmatpush3.msra.mxu0 %v357_v12 }
  0x2c   : > { %755 = vmatprep.subr.mxu0 %v896_v2 }
  0x2d   : > { %756 = vmatpush3.msra.mxu0 %v356_v13 }
  0x2e   : > { %757 = vmatprep.subr.mxu0 %v896_v2 }
  0x2f   : > { %758 = vmatpush3.msra.mxu0 %v355_v14 }
  0x30   : > { %759 = vmatprep.subr.mxu0 %v896_v2 }
  0x31   : > { %760 = vmatpush3.msra.mxu0 %v354_v15 }
  0x32   : > { %761 = vmatprep.subr.mxu0 %v896_v2 }
  0x33   : > { %762 = vmatpush3.msra.mxu0 %v353_v16 }
  0x34   : > { %763 = vmatprep.subr.mxu0 %v896_v2 }
  0x35   : > { %764 = vmatpush3.msra.mxu0 %v352_v17 }
  0x36   : > { %766 = vmatmul.mubr.f32.vlgmr.msra.gmra.mxu0 %v351_v18 }
  0xf5   : > { %443 = sbr.rel (%p691_p7) target bundleno = 789 (0x315), region = 52 }
  0xf6   : > { %v434_v20 = vpop.f32.mrf.mxu0 }
  0xf7   : > { %v438_v21 = vadd.f32 %v434_v20, %v350_v19 }
  0xf8   : > { %v767_v22 = vpop.f32.mrf.mxu0 }
  0xf9   : > { %439 = vst [vmem:[#allocation2] sm:$0xff] %v438_v21 }
  0xfa   : > { %v469_v23 = vld [vmem:[%s1086_s3 + $0x78] sm:$0xff]  ;;  %v898_v24 = vmov 0.0   ;;  %v468_v25 = vld [vmem:[%s1086_s3 + $0x70] sm:$0xff]  ;;  %vm899_vm1 = vmmov 0   ;;  %v467_v26 = vld [vmem:[%s1086_s3 + $0x68] sm:$0xff] }
  0xfb   : > { %768 = vmatprep.subr.mxu0 %v898_v24  ;;  %800 = vmatprep.mubr.msk.f32.mxu0 %vm899_vm1, %v898_v24  ;;  %v466_v27 = vld [vmem:[%s1086_s3 + $0x60] sm:$0xff]  ;;  %v465_v28 = vld [vmem:[%s1086_s3 + $0x58] sm:$0xff]  ;;  %v464_v29 = vld [vmem:[%s1086_s3 + $0x50] sm:$0xff] }
  0xfc   : > { %769 = vmatpush3.msra.mxu0 %v469_v23  ;;  %v463_v30 = vld [vmem:[%s1086_s3 + $0x48] sm:$0xff]  ;;  %v462_v31 = vld [vmem:[%s1086_s3 + $0x40] sm:$0xff]  ;;  %v461_v32 = vld [vmem:[%s1086_s3 + $0x38] sm:$0xff] }
  0xfd   : > { %770 = vmatprep.subr.mxu0 %v898_v24  ;;  %v460_v33 = vld [vmem:[%s1086_s3 + $0x30] sm:$0xff]  ;;  %v459_v34 = vld [vmem:[%s1086_s3 + $0x28] sm:$0xff]  ;;  %v458_v35 = vld [vmem:[%s1086_s3 + $0x20] sm:$0xff] }
  0xfe   : > { %771 = vmatpush3.msra.mxu0 %v468_v25  ;;  %v692_v37 = vld [vmem:[%s1085_s2] ss:$0 sm:$0xff]  ;;  %v457_v38 = vld [vmem:[%s1086_s3 + $0x18] sm:$0xff]  ;;  %v456_v39 = vld [vmem:[%s1086_s3 + $0x10] sm:$0xff] }
  0xff   : > { %772 = vmatprep.subr.mxu0 %v898_v24  ;;  %v455_v41 = vld [vmem:[%s1086_s3 + $0x8] sm:$0xff]  ;;  %v454_v42 = vld [vmem:[%s1086_s3] sm:$0xff] }
 0x100   : > { %773 = vmatpush3.msra.mxu0 %v467_v26  ;;  %v444_v36 = vld [vmem:[#allocation2] sm:$0xff] }
 0x101   : > { %774 = vmatprep.subr.mxu0 %v898_v24  ;;  %v452_v40 = vadd.f32 %v692_v37, %v444_v36  ;;  %v693_v44 = vld [vmem:[%s1087_s4] ss:$0 sm:$0xff] }
 0x102   : > { %775 = vmatpush3.msra.mxu0 %v466_v27  ;;  %v558_v52 = vld [vmem:[%s1088_s5] sm:$0xff] }
 0x103   : > { %776 = vmatprep.subr.mxu0 %v898_v24  ;;  %v453_v43 = vmax.f32 %v452_v40, 0.0  ;;  %559 = vst [vmem:[%s1090_s7 + $0x8] sm:$0xff] %v558_v52 }
 0x104   : > { %777 = vmatpush3.msra.mxu0 %v465_v28 }
 0x105   : > { %778 = vmatprep.subr.mxu0 %v898_v24 }
 0x106   : > { %779 = vmatpush3.msra.mxu0 %v464_v29 }
 0x107   : > { %780 = vmatprep.subr.mxu0 %v898_v24 }
 0x108   : > { %781 = vmatpush3.msra.mxu0 %v463_v30 }
 0x109   : > { %782 = vmatprep.subr.mxu0 %v898_v24 }
 0x10a   : > { %783 = vmatpush3.msra.mxu0 %v462_v31 }
 0x10b   : > { %784 = vmatprep.subr.mxu0 %v898_v24 }
 0x10c   : > { %785 = vmatpush3.msra.mxu0 %v461_v32 }
 0x10d   : > { %786 = vmatprep.subr.mxu0 %v898_v24 }
 0x10e   : > { %787 = vmatpush3.msra.mxu0 %v460_v33 }
 0x10f   : > { %788 = vmatprep.subr.mxu0 %v898_v24 }
 0x110   : > { %789 = vmatpush3.msra.mxu0 %v459_v34 }
 0x111   : > { %790 = vmatprep.subr.mxu0 %v898_v24 }
 0x112   : > { %791 = vmatpush3.msra.mxu0 %v458_v35 }
 0x113   : > { %792 = vmatprep.subr.mxu0 %v898_v24 }
 0x114   : > { %793 = vmatpush3.msra.mxu0 %v457_v38 }
 0x115   : > { %794 = vmatprep.subr.mxu0 %v898_v24 }
 0x116   : > { %795 = vmatpush3.msra.mxu0 %v456_v39 }
 0x117   : > { %796 = vmatprep.subr.mxu0 %v898_v24 }
 0x118   : > { %797 = vmatpush3.msra.mxu0 %v455_v41 }
 0x119   : > { %798 = vmatprep.subr.mxu0 %v898_v24 }
 0x11a   : > { %799 = vmatpush3.msra.mxu0 %v454_v42 }
 0x11b   : > { %801 = vmatmul.mubr.f32.vlgmr.msra.gmra.mxu0 %v453_v43 }
 0x1db   : > { %v543_v45 = vpop.f32.mrf.mxu0 }
 0x1dc   : > { %v544_v46 = vadd.f32 %v693_v44, %v543_v45 }
 0x1dd   : > { %v802_v47 = vpop.f32.mrf.mxu0 }
 0x1de   : > { %547 = vst [vmem:[#allocation3] sm:$0xff] %v544_v46  ;;  %548 = vmax.xlane.f32.xlu0 %v544_v46 }
 0x267   : > { %v549_v48 = vpop.xlane.xlu0 %548 }
 0x268   : > { %v550_v49 = vsub.f32 %v544_v46, %v549_v48 }
 0x26a   : > { %v551_v50 = vmul.f32 1.442695, %v550_v49 }
 0x26c   : > { %839 = vpow2.f32 %v551_v50 }
 0x279   : > { %v840_v51 = vpop.eup %839 }
 0x27a   : > { %553 = vadd.xlane.f32.xlu0 %v840_v51 }
 0x303   : > { %v554_v53 = vpop.xlane.xlu0 %553 }
 0x304   : > { %841 = vrcp.f32 %v554_v53 }
 0x311   : > { %v842_v54 = vpop.eup %841 }
 0x312   : > { %v556_v55 = vmul.f32 %v842_v54, %v840_v51 }
 0x314   : > { %557 = vst [vmem:[%s1090_s7] sm:$0xff] %v556_v55 }
 0x315 PF: > { %p1059_p8 = scmp.eq.s32.totalorder %s682_s27, 1  ;;  %s900_s21 = smov [#allocation3]  }
 0x316   : > { %s574_s22 = sshll.u32 %s900_s21, 4  ;;  %s575_s22 = int_to_ptr.vmem [resolvable:$true] %s574_s22 }
 0x317   : > { %s843_s23 = scalar_lea.vmem %s575_s22, 128  ;;  %p850_p12 = scmp.lt.s32.totalorder %s575_s22, %s575_s22 }
 0x318   : > { %p844_p9 = scmp.ne.s32.totalorder %s575_s22, %s843_s23  ;;  %p851_p13 = scmp.lt.s32.totalorder %s843_s23, %s843_s23 }
 0x31a   : > { %p845_p10 = pnand %p844_p9, %p1059_p8  ;;  %p852_p0 = por %p851_p13, %p850_p12 }
 0x31c   : > { %p846_p11 = pneg %p845_p10 }
 0x31e   : > { %p853_p1 = pnand %p852_p0, %p846_p11 }
 0x320   : > { %856 = shalt.err (!%p853_p1)
}
 0x321   : > { %804 = dma.vmem_to_hbm [thread:$0]  (%p1059_p8), %s575_s22, 128, %s1089_s6, [#allocation4]  }
 0x322   : > { %880 = dma.done.wait (%p1059_p8), [#allocation4], 128  }
 0x323   : > { %882 = vsyncadd (%p1059_p8), [#allocation4], 4294967168 }
 0x324 PF: > { %s19_s26 = sadd.s32 1, %s893_s26   ;;  %s1092_s24 = smov %s889_s25 }
 0x325   : > { %p16_p2 = scmp.ge.s32.totalorder %s19_s26, 4   ;;  %s1093_s25 = smov %s1095_s28 }
 0x327   :  { %18 = sbr.rel (!%p16_p2) target bundleno = 2 (0x2), region = 98 }
 0x32c   :  { %598 = vsyncpa [#allocation4], 1 }
 0x32d   :  { %600 = vsyncpa [#allocation4 + $0x1], 1 }

// kernel: cl_scetm_forward.3
= control target key start
LH: loop header
LB: loop body
LE: loop exit
PB: predicated region body
PF: predicated region fallthrough
CT: control target
= control target key end

     0   :  { %7 = vsyncpa [#allocation6], 0  ;;  %s767_s9 = smov 0   ;;  %s769_s10 = smov 0   ;;  %s959_s0 = inlined_call_operand.vmem [shape: f32[8,256], index: 0, kind: input, shape index: {}]   ;;  %s960_s1 = inlined_call_operand.vmem [shape: f32[256,256], index: 1, kind: input, shape index: {}]   ;;  %s961_s2 = inlined_call_operand.hbm [shape: f32[8,256], index: 2, kind: output, shape index: {}]  }
   0x1   :  { %s771_s11 = smov 0   ;;  %s773_s12 = smov 0  }
   0x2   :  { %s775_s13 = smov 0  }
   0x3 LB: > { %s569_s14 = sadd.s32 4294967295, %s745_s13   ;;  %s22_s15 = sadd.s32 1, %s741_s12  ;;  %s745_s13 = sphi %s775_s13, %s13_s13   ;;  %s741_s12 = sphi %s773_s12, %s966_s12   ;;  %s737_s11 = sphi %s771_s11, %s965_s11   ;;  %s733_s10 = sphi %s769_s10, %s964_s10   ;;  %s729_s9 = sphi %s767_s9, %s963_s9  }
   0x4   : > { %p23_p0 = scmp.ge.s32.totalorder %s22_s15, 2  ;;  %p65_p1 = scmp.ne.s32.totalorder %s733_s10, %s729_s9 }
   0x5   : > { %p66_p2 = scmp.eq.s32.totalorder %s745_s13, 0  ;;  %s58_s17 = sadd.s32 1, %s733_s10 }
   0x6   : > { %s968_s15 = smov (%p23_p0, %s22_s15), 0  ;;  %p572_p5 = scmp.ge.s32.totalorder %s745_s13, 2 }
   0x7   : > { %p67_p3 = por %p66_p2, %p65_p1  ;;  %s55_s16 = ssub.s32 %s741_s12, %s968_s15 }
   0x8   : > { %p56_p4 = scmp.eq.s32.totalorder %s55_s16, 0  ;;  %125 = sbr.rel (%p572_p5) target bundleno = 33 (0x21), region = 20 }
   0xa   : > { %s803_s18 = scalar_select %p56_p4, %s733_s10, %s58_s17  }
   0xd   : > { %128 = sbr.rel (!%p67_p3) target bundleno = 33 (0x21), region = 24  ;;  %s130_s19 = sand.u32 (%p67_p3), 1, %s733_s10  }
   0xe   : > { %s574_s20 = sshll.u32 (%p67_p3), %s741_s12, 3  ;;  %s573_s21 = sshll.u32 (%p67_p3), %s130_s19, 8 }
   0xf   : > { %s811_s24 = scalar_lea.vmem (%p67_p3), %s960_s1, %s574_s20  ;;  %s816_s25 = scalar_lea.vmem (%p67_p3), [#allocation4], %s573_s21 }
  0x10   : > { %v225_v0 = vld [vmem:[%s811_s24] sm:$0xff] (%p67_p3)  ;;  %v227_v1 = vld [vmem:[%s811_s24 + $0x10] sm:$0xff] (%p67_p3) }
  0x11   : > { %v229_v2 = vld [vmem:[%s811_s24 + $0x20] sm:$0xff] (%p67_p3)  ;;  %226 = vst [vmem:[%s816_s25] sm:$0xff] (%p67_p3), %v225_v0  ;;  %228 = vst [vmem:[%s816_s25 + $0x8] sm:$0xff] (%p67_p3), %v227_v1  ;;  %v231_v3 = vld [vmem:[%s811_s24 + $0x30] sm:$0xff] (%p67_p3) }
  0x12   : > { %230 = vst [vmem:[%s816_s25 + $0x10] sm:$0xff] %v229_v2  ;;  %v233_v4 = vld [vmem:[%s811_s24 + $0x40] sm:$0xff]  ;;  %v235_v5 = vld [vmem:[%s811_s24 + $0x50] sm:$0xff]  ;;  %232 = vst [vmem:[%s816_s25 + $0x18] sm:$0xff] %v231_v3 }
  0x13   : > { %234 = vst [vmem:[%s816_s25 + $0x20] sm:$0xff] %v233_v4  ;;  %236 = vst [vmem:[%s816_s25 + $0x28] sm:$0xff] %v235_v5  ;;  %v237_v6 = vld [vmem:[%s811_s24 + $0x60] sm:$0xff]  ;;  %v239_v7 = vld [vmem:[%s811_s24 + $0x70] sm:$0xff] }
  0x14   : > { %v241_v8 = vld [vmem:[%s811_s24 + $0x80] sm:$0xff]  ;;  %238 = vst [vmem:[%s816_s25 + $0x30] sm:$0xff] %v237_v6  ;;  %240 = vst [vmem:[%s816_s25 + $0x38] sm:$0xff] %v239_v7  ;;  %v243_v9 = vld [vmem:[%s811_s24 + $0x90] sm:$0xff] }
  0x15   : > { %242 = vst [vmem:[%s816_s25 + $0x40] sm:$0xff] %v241_v8  ;;  %v245_v10 = vld [vmem:[%s811_s24 + $0xa0] sm:$0xff]  ;;  %v247_v11 = vld [vmem:[%s811_s24 + $0xb0] sm:$0xff]  ;;  %244 = vst [vmem:[%s816_s25 + $0x48] sm:$0xff] %v243_v9 }
  0x16   : > { %246 = vst [vmem:[%s816_s25 + $0x50] sm:$0xff] %v245_v10  ;;  %248 = vst [vmem:[%s816_s25 + $0x58] sm:$0xff] %v247_v11  ;;  %v249_v12 = vld [vmem:[%s811_s24 + $0xc0] sm:$0xff]  ;;  %v251_v13 = vld [vmem:[%s811_s24 + $0xd0] sm:$0xff] }
  0x17   : > { %v253_v14 = vld [vmem:[%s811_s24 + $0xe0] sm:$0xff]  ;;  %250 = vst [vmem:[%s816_s25 + $0x60] sm:$0xff] %v249_v12  ;;  %252 = vst [vmem:[%s816_s25 + $0x68] sm:$0xff] %v251_v13  ;;  %v255_v15 = vld [vmem:[%s811_s24 + $0xf0] sm:$0xff] }
  0x18   : > { %254 = vst [vmem:[%s816_s25 + $0x70] sm:$0xff] %v253_v14  ;;  %v257_v16 = vld [vmem:[%s811_s24 + $0x100] sm:$0xff]  ;;  %v259_v17 = vld [vmem:[%s811_s24 + $0x110] sm:$0xff]  ;;  %256 = vst [vmem:[%s816_s25 + $0x78] sm:$0xff] %v255_v15 }
  0x19   : > { %258 = vst [vmem:[%s816_s25 + $0x80] sm:$0xff] %v257_v16  ;;  %260 = vst [vmem:[%s816_s25 + $0x88] sm:$0xff] %v259_v17  ;;  %v261_v18 = vld [vmem:[%s811_s24 + $0x120] sm:$0xff]  ;;  %v263_v19 = vld [vmem:[%s811_s24 + $0x130] sm:$0xff] }
  0x1a   : > { %v265_v20 = vld [vmem:[%s811_s24 + $0x140] sm:$0xff]  ;;  %262 = vst [vmem:[%s816_s25 + $0x90] sm:$0xff] %v261_v18  ;;  %264 = vst [vmem:[%s816_s25 + $0x98] sm:$0xff] %v263_v19  ;;  %v267_v21 = vld [vmem:[%s811_s24 + $0x150] sm:$0xff] }
  0x1b   : > { %266 = vst [vmem:[%s816_s25 + $0xa0] sm:$0xff] %v265_v20  ;;  %v269_v22 = vld [vmem:[%s811_s24 + $0x160] sm:$0xff]  ;;  %v271_v23 = vld [vmem:[%s811_s24 + $0x170] sm:$0xff]  ;;  %268 = vst [vmem:[%s816_s25 + $0xa8] sm:$0xff] %v267_v21 }
  0x1c   : > { %270 = vst [vmem:[%s816_s25 + $0xb0] sm:$0xff] %v269_v22  ;;  %272 = vst [vmem:[%s816_s25 + $0xb8] sm:$0xff] %v271_v23  ;;  %v273_v24 = vld [vmem:[%s811_s24 + $0x180] sm:$0xff]  ;;  %v275_v25 = vld [vmem:[%s811_s24 + $0x190] sm:$0xff] }
  0x1d   : > { %v277_v26 = vld [vmem:[%s811_s24 + $0x1a0] sm:$0xff]  ;;  %274 = vst [vmem:[%s816_s25 + $0xc0] sm:$0xff] %v273_v24  ;;  %276 = vst [vmem:[%s816_s25 + $0xc8] sm:$0xff] %v275_v25  ;;  %v279_v27 = vld [vmem:[%s811_s24 + $0x1b0] sm:$0xff] }
  0x1e   : > { %278 = vst [vmem:[%s816_s25 + $0xd0] sm:$0xff] %v277_v26  ;;  %v281_v28 = vld [vmem:[%s811_s24 + $0x1c0] sm:$0xff]  ;;  %v283_v29 = vld [vmem:[%s811_s24 + $0x1d0] sm:$0xff]  ;;  %280 = vst [vmem:[%s816_s25 + $0xd8] sm:$0xff] %v279_v27 }
  0x1f   : > { %282 = vst [vmem:[%s816_s25 + $0xe0] sm:$0xff] %v281_v28  ;;  %284 = vst [vmem:[%s816_s25 + $0xe8] sm:$0xff] %v283_v29  ;;  %v285_v30 = vld [vmem:[%s811_s24 + $0x1e0] sm:$0xff]  ;;  %v287_v31 = vld [vmem:[%s811_s24 + $0x1f0] sm:$0xff] }
  0x20   : > { %286 = vst [vmem:[%s816_s25 + $0xf0] sm:$0xff] %v285_v30  ;;  %288 = vst [vmem:[%s816_s25 + $0xf8] sm:$0xff] %v287_v31 }
  0x21 PF: > { %p575_p6 = scmp.ge.s32.totalorder %s745_s13, 1  ;;  %p293_p7 = scmp.lt.s32.totalorder %s745_s13, 3 }
  0x23   : > { %p294_p8 = pnand %p575_p6, %p293_p7 }
  0x24   : > { %s300_s26 = sand.u32 (!%p294_p8), 1, %s729_s9   ;;  %p577_p9 = scmp.ne.s32.totalorder (!%p294_p8), %s737_s11, 0 }
  0x25   : > { %297 = sbr.rel (%p294_p8) target bundleno = 869 (0x365), region = 62  ;;  %s576_s27 = sshll.u32 (!%p294_p8), %s300_s26, 8 }
  0x26   : > { %s882_s28 = scalar_lea.vmem (!%p294_p8), [#allocation4], %s576_s27 }
  0x2a   : > { %329 = sbr.rel (%p577_p9) target bundleno = 49 (0x31), region = 70 }
  0x2f   : > { %vm330_vm0 = vcmask 7168   ;;  %v747_v32 = vmov -inf   ;;  %v748_v33 = vmov 0.0  }
  0x30   : > { %331 = vst.msk [vmem:[#allocation2] sm:$0xff] %vm330_vm0, %v747_v32  ;;  %332 = vst.msk [vmem:[#allocation3] sm:$0xff] %vm330_vm0, %v748_v33 }
  0x31 PF: > { %v366_v34 = vld [vmem:[%s882_s28 + $0xf8] sm:$0xff]  ;;  %v365_v36 = vld [vmem:[%s882_s28 + $0xf0] sm:$0xff]  ;;  %v364_v38 = vld [vmem:[%s882_s28 + $0xe8] sm:$0xff]  ;;  %s578_s5 = sshll.u32 %s737_s11, 7  ;;  %v749_v7 = vmov 0   ;;  %vm463_vm1 = vcmask 7168  }
  0x32   : > { %v350_v35 = vld [vmem:[%s882_s28 + $0x78] sm:$0xff]  ;;  %585 = vmatprep.subr.mxu0 %v366_v34  ;;  %v349_v37 = vld [vmem:[%s882_s28 + $0x70] sm:$0xff]  ;;  %v348_v39 = vld [vmem:[%s882_s28 + $0x68] sm:$0xff]  ;;  %s438_s6 = sshra.s32 %s578_s5, 7  ;;  %671 = vset.pattern.permute.xlu0 %v749_v7  ;;  %p580_p10 = scmp.ne.s32.totalorder %s737_s11, 1 }
  0x33   : > { %586 = vmatpush3.msra.mxu0 %v350_v35  ;;  %v363_v40 = vld [vmem:[%s882_s28 + $0xe0] sm:$0xff]  ;;  %v362_v42 = vld [vmem:[%s882_s28 + $0xd8] sm:$0xff]  ;;  %v361_v44 = vld [vmem:[%s882_s28 + $0xd0] sm:$0xff]  ;;  %s579_s7 = sshll.u32 %s438_s6, 3 }
  0x34   : > { %587 = vmatprep.subr.mxu0 %v365_v36  ;;  %v347_v41 = vld [vmem:[%s882_s28 + $0x60] sm:$0xff]  ;;  %v346_v43 = vld [vmem:[%s882_s28 + $0x58] sm:$0xff]  ;;  %v345_v45 = vld [vmem:[%s882_s28 + $0x50] sm:$0xff]  ;;  %s441_s8 = scalar_lea.vmem [#allocation5], %s579_s7 }
  0x35   : > { %588 = vmatpush3.msra.mxu0 %v349_v37  ;;  %v360_v46 = vld [vmem:[%s882_s28 + $0xc8] sm:$0xff]  ;;  %v334_v47 = vld [vmem:[%s959_s0 + $0x8] sm:$0xff]  ;;  %v359_v49 = vld [vmem:[%s882_s28 + $0xc0] sm:$0xff] }
  0x36   : > { %589 = vmatprep.subr.mxu0 %v364_v38  ;;  %v344_v48 = vld [vmem:[%s882_s28 + $0x48] sm:$0xff]  ;;  %431 = vmatprep.mubr.f32.mxu0 %v334_v47  ;;  %v343_v50 = vld [vmem:[%s882_s28 + $0x40] sm:$0xff]  ;;  %v358_v51 = vld [vmem:[%s882_s28 + $0xb8] sm:$0xff] }
  0x37   : > { %590 = vmatpush3.msra.mxu0 %v348_v39  ;;  %v342_v52 = vld [vmem:[%s882_s28 + $0x38] sm:$0xff]  ;;  %v357_v53 = vld [vmem:[%s882_s28 + $0xb0] sm:$0xff]  ;;  %v356_v55 = vld [vmem:[%s882_s28 + $0xa8] sm:$0xff] }
  0x38   : > { %591 = vmatprep.subr.mxu0 %v363_v40  ;;  %v341_v54 = vld [vmem:[%s882_s28 + $0x30] sm:$0xff]  ;;  %v340_v56 = vld [vmem:[%s882_s28 + $0x28] sm:$0xff]  ;;  %v355_v57 = vld [vmem:[%s882_s28 + $0xa0] sm:$0xff] }
  0x39   : > { %592 = vmatpush3.msra.mxu0 %v347_v41  ;;  %v339_v58 = vld [vmem:[%s882_s28 + $0x20] sm:$0xff]  ;;  %v354_v59 = vld [vmem:[%s882_s28 + $0x98] sm:$0xff]  ;;  %v353_v61 = vld [vmem:[%s882_s28 + $0x90] sm:$0xff] }
  0x3a   : > { %593 = vmatprep.subr.mxu0 %v362_v42  ;;  %v338_v60 = vld [vmem:[%s882_s28 + $0x18] sm:$0xff]  ;;  %v337_v62 = vld [vmem:[%s882_s28 + $0x10] sm:$0xff]  ;;  %v352_v63 = vld [vmem:[%s882_s28 + $0x88] sm:$0xff] }
  0x3b   : > { %594 = vmatpush3.msra.mxu0 %v346_v43  ;;  %v336_v0 = vld [vmem:[%s882_s28 + $0x8] sm:$0xff]  ;;  %v351_v1 = vld [vmem:[%s882_s28 + $0x80] sm:$0xff]  ;;  %v333_v3 = vld [vmem:[%s959_s0] sm:$0xff] }
  0x3c   : > { %595 = vmatprep.subr.mxu0 %v361_v44  ;;  %v335_v2 = vld [vmem:[%s882_s28] sm:$0xff]  ;;  %v443_v8 = vld [vmem:[#allocation2] sm:$0xff]  ;;  %v447_v18 = vld [vmem:[#allocation3] sm:$0xff] }
  0x3d   : > { %596 = vmatpush3.msra.mxu0 %v345_v45 }
  0x3e   : > { %597 = vmatprep.subr.mxu0 %v360_v46 }
  0x3f   : > { %598 = vmatpush3.msra.mxu0 %v344_v48 }
  0x40   : > { %599 = vmatprep.subr.mxu0 %v359_v49 }
  0x41   : > { %600 = vmatpush3.msra.mxu0 %v343_v50 }
  0x42   : > { %601 = vmatprep.subr.mxu0 %v358_v51 }
  0x43   : > { %602 = vmatpush3.msra.mxu0 %v342_v52 }
  0x44   : > { %603 = vmatprep.subr.mxu0 %v357_v53 }
  0x45   : > { %604 = vmatpush3.msra.mxu0 %v341_v54 }
  0x46   : > { %605 = vmatprep.subr.mxu0 %v356_v55 }
  0x47   : > { %606 = vmatpush3.msra.mxu0 %v340_v56 }
  0x48   : > { %607 = vmatprep.subr.mxu0 %v355_v57 }
  0x49   : > { %608 = vmatpush3.msra.mxu0 %v339_v58 }
  0x4a   : > { %609 = vmatprep.subr.mxu0 %v354_v59 }
  0x4b   : > { %610 = vmatpush3.msra.mxu0 %v338_v60 }
  0x4c   : > { %611 = vmatprep.subr.mxu0 %v353_v61 }
  0x4d   : > { %612 = vmatpush3.msra.mxu0 %v337_v62 }
  0x4e   : > { %613 = vmatprep.subr.mxu0 %v352_v63 }
  0x4f   : > { %614 = vmatpush3.msra.mxu0 %v336_v0 }
  0x50   : > { %615 = vmatprep.subr.mxu0 %v351_v1 }
  0x51   : > { %616 = vmatpush3.msra.mxu0 %v335_v2 }
  0x52   : > { %432 = vmatmul.mubr.f32.vlgmr.msra.gmra.mxu0 %v333_v3 }
 0x112   : > { %v617_v4 = vpop.f32.mrf.mxu0 }
 0x114   : > { %v618_v5 = vpop.f32.mrf.mxu0 }
 0x115   : > { %v619_v6 = vadd.f32 %v618_v5, %v617_v4 }
 0x117   : > { %442 = vst [vmem:[%s441_s8] sm:$0xff] %v619_v6  ;;  %444 = vmax.xlane.f32.xlu0 %v619_v6 }
 0x1a0   : > { %v445_v9 = vpop.xlane.xlu0 %444 }
 0x1a1   : > { %v446_v10 = vmax.f32 %v443_v8, %v445_v9 }
 0x1a3   : > { %v448_v11 = vsub.f32 %v443_v8, %v446_v10  ;;  %465 = vst.msk [vmem:[#allocation2] sm:$0xff] %vm463_vm1, %v446_v10  ;;  %454 = vperm.xlu0 %671, %v446_v10  }
 0x1a5   : > { %v449_v16 = vmul.f32 1.442695, %v448_v11 }
 0x21e   : > { %v455_v12 = vpop.permute.xlu0 %454 }
 0x21f   : > { %v457_v13 = vsub.f32 %v619_v6, %v455_v12 }
 0x221   : > { %v458_v14 = vmul.f32 1.442695, %v457_v13 }
 0x223   : > { %672 = vpow2.f32 %v458_v14 }
 0x224   : > { %674 = vpow2.f32 %v449_v16 }
 0x230   : > { %v673_v15 = vpop.eup %672 }
 0x231   : > { %460 = vadd.xlane.f32.xlu1 %v673_v15  ;;  %v675_v17 = vpop.eup %674 }
 0x232   : > { %v451_v19 = vmul.f32 %v675_v17, %v447_v18 }
 0x2b9   : > { %469 = sbr.rel (%p580_p10) target bundleno = 854 (0x356), region = 74 }
 0x2ba   : > { %v461_v20 = vpop.xlane.xlu1 %460 }
 0x2bb   : > { %v462_v21 = vadd.f32 %v461_v20, %v451_v19 }
 0x2bd   : > { %464 = vst.msk [vmem:[#allocation3] sm:$0xff] %vm463_vm1, %v462_v21 }
 0x2be   : > { %v750_v23 = vmov 0   ;;  %v470_v25 = vld [vmem:[#allocation2] sm:$0xff]  ;;  %v475_v28 = vld [vmem:[#allocation5] sm:$0xff]  ;;  %v476_v29 = vld [vmem:[#allocation5 + $0x8] sm:$0xff] }
 0x2bf   : > { %676 = vset.pattern.permute.xlu0 %v750_v23 }
 0x2c4   : > { %v471_v22 = vld [vmem:[#allocation3] sm:$0xff] }
 0x2c5   : > { %677 = vlog2.f32 %v471_v22 }
 0x2d2   : > { %v678_v24 = vpop.eup %677 }
 0x2d3   : > { %v473_v26 = vmul.f32 0.6931472, %v678_v24 }
 0x2d5   : > { %v474_v27 = vadd.f32 %v473_v26, %v470_v25 }
 0x2d7   : > { %479 = vperm.xlu0 %676, %v474_v27  }
 0x352   : > { %v480_v30 = vpop.permute.xlu0 %479 }
 0x353   : > { %v482_v31 = vsub.f32 %v475_v28, %v480_v30  ;;  %v483_v32 = vsub.f32 %v476_v29, %v480_v30 }
 0x355   : > { %484 = vst [vmem:[#allocation5] sm:$0xff] %v482_v31  ;;  %485 = vst [vmem:[#allocation5 + $0x8] sm:$0xff] %v483_v32 }
 0x356 PF: > { %p929_p11 = scmp.eq.s32.totalorder %s569_s14, 1  ;;  %s751_s11 = smov [#allocation5]  }
 0x357   : > { %s496_s16 = sshll.u32 %s751_s11, 4  ;;  %s497_s16 = int_to_ptr.vmem [resolvable:$true] %s496_s16 }
 0x358   : > { %s679_s17 = scalar_lea.vmem %s497_s16, 256  ;;  %p686_p1 = scmp.lt.s32.totalorder %s497_s16, %s497_s16 }
 0x359   : > { %p680_p12 = scmp.ne.s32.totalorder %s497_s16, %s679_s17  ;;  %p687_p2 = scmp.lt.s32.totalorder %s679_s17, %s679_s17 }
 0x35b   : > { %p681_p13 = pnand %p680_p12, %p929_p11  ;;  %p688_p3 = por %p687_p2, %p686_p1 }
 0x35d   : > { %p682_p0 = pneg %p681_p13 }
 0x35f   : > { %p689_p4 = pnand %p688_p3, %p682_p0 }
 0x361   : > { %692 = shalt.err (!%p689_p4)
}
 0x362   : > { %621 = dma.vmem_to_hbm [thread:$0]  (%p929_p11), %s497_s16, 256, %s961_s2, [#allocation6]  }
 0x363   : > { %724 = dma.done.wait (%p929_p11), [#allocation6], 256  }
 0x364   : > { %726 = vsyncadd (%p929_p11), [#allocation6], 4294967040 }
 0x365 PF: > { %s13_s13 = sadd.s32 1, %s745_s13   ;;  %s963_s9 = smov %s733_s10 }
 0x366   : > { %p10_p5 = scmp.ge.s32.totalorder %s13_s13, 4   ;;  %s964_s10 = smov %s803_s18 }
 0x367   : > { %s965_s11 = smov %s741_s12  ;;  %s966_s12 = smov %s968_s15 }
 0x368   :  { %12 = sbr.rel (!%p10_p5) target bundleno = 3 (0x3), region = 111 }
 0x36d   :  { %509 = vsyncpa [#allocation6], 1 }
 0x36e   :  { %511 = vsyncpa [#allocation6 + $0x1], 1 }

</bundles_post_ra>
